<compile_context>
chip_gen: v7x
topology: tpu7x:2x2x1
jax: 0.10.0
libtpu: 0.0.40
codegen_flags: <defaults>
</compile_context>

<pallas_src>
import functools

import jax
import jax.numpy as jnp
from jax.experimental import pallas as pl
from jax.experimental.pallas import tpu as pltpu


_LANE = 128
_SUB = 8
_BN_EPS = 1e-5
_NORM_EPS = 1e-12
_TM_MAX = 512                       # v7x-safe batch tile
_VMEM_LIMIT = 40 * 1024 * 1024      # headroom under v7x's 64 MiB / TC
_STATS_SHARDS = 2                   # per-core partial sums (v7x megacore)


def _round_up(n, m):
    return ((n + m - 1) // m) * m


def _pick_tm(b, d_in):
    """Batch tile: multiple of 8, minimal padding, VMEM-safe for large d_in."""
    cap = (4 * 1024 * 1024) // (4 * max(d_in, 1))      # keep 2x f32 x-tile small
    cap = max(_SUB, min(_TM_MAX, (cap // _SUB) * _SUB))
    n_tiles = max(1, -(-b // cap))
    tm = _round_up(-(-b // n_tiles), _SUB)
    return max(_SUB, min(tm, cap))


# ---------------------------------------------------------------------------
# Pass 1: d1 = x @ W1 (bf16 MXU, f32 acc); accumulate masked sum / sum-of-sq.
# Grid: (core_shard, batch_tile).  Stats outputs are per-shard partials.
# ---------------------------------------------------------------------------
def _stats1_kernel(x_ref, w1_ref, s_ref, ss_ref, *, tm, nbh, b_true):
    c = pl.program_id(0)
    i = pl.program_id(1)

    @pl.when(i == 0)
    def _():
        s_ref[...] = jnp.zeros_like(s_ref)
        ss_ref[...] = jnp.zeros_like(ss_ref)

    d1 = jnp.dot(x_ref[...].astype(jnp.bfloat16), w1_ref[...],
                 preferred_element_type=jnp.float32)

    # mask rows beyond the true batch (ragged last tile / duplicated clamp tile)
    row = (c * nbh + i) * tm + jax.lax.broadcasted_iota(jnp.int32, (tm, 1), 0)
    dm = jnp.where(row < b_true, d1, 0.0)
    s_ref[...] += jnp.sum(dm, axis=0, keepdims=True)
    ss_ref[...] += jnp.sum(dm * dm, axis=0, keepdims=True)


# ---------------------------------------------------------------------------
# Pass 2: recompute d1, apply folded BN1 + ReLU, d2 = h1 @ W2; accumulate stats.
# ---------------------------------------------------------------------------
def _stats2_kernel(x_ref, w1_ref, a1_ref, c1_ref, w2_ref, s_ref, ss_ref, *,
                   tm, nbh, b_true):
    c = pl.program_id(0)
    i = pl.program_id(1)

    @pl.when(i == 0)
    def _():
        s_ref[...] = jnp.zeros_like(s_ref)
        ss_ref[...] = jnp.zeros_like(ss_ref)

    d1 = jnp.dot(x_ref[...].astype(jnp.bfloat16), w1_ref[...],
                 preferred_element_type=jnp.float32)
    h1 = jnp.maximum(d1 * a1_ref[...] + c1_ref[...], 0.0)
    d2 = jnp.dot(h1.astype(jnp.bfloat16), w2_ref[...],
                 preferred_element_type=jnp.float32)

    row = (c * nbh + i) * tm + jax.lax.broadcasted_iota(jnp.int32, (tm, 1), 0)
    dm = jnp.where(row < b_true, d2, 0.0)
    s_ref[...] += jnp.sum(dm, axis=0, keepdims=True)
    ss_ref[...] += jnp.sum(dm * dm, axis=0, keepdims=True)


# ---------------------------------------------------------------------------
# Pass 3: fully fused fc1/BN1/ReLU/fc2/BN2/ReLU/fc3 + L2-normalize.
# Output is lane-dense (latent_dim padded to 128 with zero weights/bias).
# ---------------------------------------------------------------------------
def _encode_kernel(x_ref, w1_ref, a1_ref, c1_ref, w2_ref, a2_ref, c2_ref,
                   w3_ref, b3_ref, o_ref):
    d1 = jnp.dot(x_ref[...].astype(jnp.bfloat16), w1_ref[...],
                 preferred_element_type=jnp.float32)
    h1 = jnp.maximum(d1 * a1_ref[...] + c1_ref[...], 0.0)
    d2 = jnp.dot(h1.astype(jnp.bfloat16), w2_ref[...],
                 preferred_element_type=jnp.float32)
    h2 = jnp.maximum(d2 * a2_ref[...] + c2_ref[...], 0.0)
    z = jnp.dot(h2.astype(jnp.bfloat16), w3_ref[...],
                preferred_element_type=jnp.float32) + b3_ref[...]
    # padded output columns have zero weight/bias, so the norm is unaffected
    sumsq = jnp.sum(z * z, axis=1, keepdims=True)
    inv = jax.lax.rsqrt(jnp.maximum(sumsq, _NORM_EPS * _NORM_EPS))
    o_ref[...] = z * inv


def _fold_bn(s_raw, ss_raw, n, gamma, beta):
    """Fold BN (batch stats, biased var) into scale a / shift c.

    Stats were accumulated on the PRE-bias activation d; since BN subtracts
    the batch mean, the linear bias cancels:  h = a * d + c  with
    a = gamma * rsqrt(var(d)+eps),  c = beta - mean(d) * a.
    """
    s = s_raw.reshape(_STATS_SHARDS, _SUB, -1)[:, 0, :].sum(axis=0, keepdims=True)
    ss = ss_raw.reshape(_STATS_SHARDS, _SUB, -1)[:, 0, :].sum(axis=0, keepdims=True)
    mu = s / n
    var = jnp.maximum(ss / n - mu * mu, 0.0)
    a = gamma * jax.lax.rsqrt(var + _BN_EPS)
    c = beta - mu * a
    return a, c


def prepare_params(params):
    """One-time parameter prep (hoisted out of the hot path)."""
    latent_dim = params["w3"].shape[1]
    np_ = _round_up(latent_dim, _LANE)
    w3_p = jnp.zeros((params["w3"].shape[0], np_), jnp.bfloat16)
    w3_p = w3_p.at[:, :latent_dim].set(params["w3"].astype(jnp.bfloat16))
    b3_p = jnp.zeros((1, np_), jnp.float32).at[:, :latent_dim].set(params["b3"])
    # b1 / b2 are intentionally dropped: they cancel inside BatchNorm.
    return {
        "w1": params["w1"].astype(jnp.bfloat16),
        "w2": params["w2"].astype(jnp.bfloat16),
        "w3_p": w3_p,
        "b3_p": b3_p,
        "g1": params["g1"], "be1": params["be1"],
        "g2": params["g2"], "be2": params["be2"],
        "latent_dim": latent_dim,
    }


def protein_encoder_forward(x, prep):
    """x: (B, input_dim) float32.  prep: output of prepare_params()."""
    B, d_in = x.shape
    latent_dim = prep["latent_dim"]
    h1_dim = prep["w1"].shape[1]      # 256
    h2_dim = prep["w2"].shape[1]      # 128
    np_ = prep["w3_p"].shape[1]

    tm = _pick_tm(B, d_in)
    nb = -(-B // tm)                             # number of batch tiles
    nbh = -(-nb // _STATS_SHARDS)                # tiles per core shard
    nb_last = nb - 1

    # stats passes: (core_shard, batch_tile); clamp OOB shard tiles to the last
    # valid tile (their rows are masked out of the statistics anyway).
    x_map2 = lambda c, i: (jnp.minimum(c * nbh + i, nb_last), 0)
    const2 = lambda c, i: (0, 0)
    stat_map = lambda c, i: (c, 0)

    cp_stats = pltpu.CompilerParams(
        dimension_semantics=("parallel", "arbitrary"),
        vmem_limit_bytes=_VMEM_LIMIT)
    cp_par = pltpu.CompilerParams(
        dimension_semantics=("parallel",), vmem_limit_bytes=_VMEM_LIMIT)

    stat_shape = lambda n: jax.ShapeDtypeStruct(
        (_STATS_SHARDS * _SUB, n), jnp.float32)
    stat_spec = lambda n: pl.BlockSpec((_SUB, n), stat_map)

    # ---- pass 1: BN1 batch statistics of d1 = x @ W1 ------------------------
    s1, ss1 = pl.pallas_call(
        functools.partial(_stats1_kernel, tm=tm, nbh=nbh, b_true=B),
        grid=(_STATS_SHARDS, nbh),
        in_specs=[pl.BlockSpec((tm, d_in), x_map2),
                  pl.BlockSpec((d_in, h1_dim), const2)],
        out_specs=(stat_spec(h1_dim), stat_spec(h1_dim)),
        out_shape=(stat_shape(h1_dim), stat_shape(h1_dim)),
        compiler_params=cp_stats,
    )(x, prep["w1"])
    a1, c1 = _fold_bn(s1, ss1, B, prep["g1"], prep["be1"])

    # ---- pass 2: recompute d1, BN1+ReLU, BN2 batch statistics of d2 ---------
    s2, ss2 = pl.pallas_call(
        functools.partial(_stats2_kernel, tm=tm, nbh=nbh, b_true=B),
        grid=(_STATS_SHARDS, nbh),
        in_specs=[pl.BlockSpec((tm, d_in), x_map2),
                  pl.BlockSpec((d_in, h1_dim), const2),
                  pl.BlockSpec((1, h1_dim), const2),
                  pl.BlockSpec((1, h1_dim), const2),
                  pl.BlockSpec((h1_dim, h2_dim), const2)],
        out_specs=(stat_spec(h2_dim), stat_spec(h2_dim)),
        out_shape=(stat_shape(h2_dim), stat_shape(h2_dim)),
        compiler_params=cp_stats,
    )(x, prep["w1"], a1, c1, prep["w2"])
    a2, c2 = _fold_bn(s2, ss2, B, prep["g2"], prep["be2"])

    # ---- pass 3: fused encode + L2 normalize (x in, z out only) -------------
    row1 = lambda i: (i, 0)
    const1 = lambda i: (0, 0)
    z_p = pl.pallas_call(
        _encode_kernel,
        grid=(nb,),
        in_specs=[pl.BlockSpec((tm, d_in), row1),
                  pl.BlockSpec((d_in, h1_dim), const1),
                  pl.BlockSpec((1, h1_dim), const1),
                  pl.BlockSpec((1, h1_dim), const1),
                  pl.BlockSpec((h1_dim, h2_dim), const1),
                  pl.BlockSpec((1, h2_dim), const1),
                  pl.BlockSpec((1, h2_dim), const1),
                  pl.BlockSpec((h2_dim, np_), const1),
                  pl.BlockSpec((1, np_), const1)],
        out_specs=pl.BlockSpec((tm, np_), row1),
        out_shape=jax.ShapeDtypeStruct((B, np_), jnp.float32),
        compiler_params=cp_par,
    )(x, prep["w1"], a1, c1, prep["w2"], a2, c2, prep["w3_p"], prep["b3_p"])

    return z_p[:, :latent_dim]


# ---------------------------------------------------------------------------
# Deterministic synthetic parameters + pure-JAX f32 reference
# ---------------------------------------------------------------------------
def init_params(key, input_dim, latent_dim):
    ks = jax.random.split(key, 8)

    def lin(kw, kb, fan_in, fan_out):
        # weight stored as (in, out) so the kernel computes x @ W + b
        w = jax.random.normal(kw, (fan_in, fan_out), jnp.float32) * (1.0 / jnp.sqrt(fan_in))
        b = jax.random.normal(kb, (1, fan_out), jnp.float32) * 0.01
        return w, b

    w1, b1 = lin(ks[0], ks[1], input_dim, 256)
    w2, b2 = lin(ks[2], ks[3], 256, 128)
    w3, b3 = lin(ks[4], ks[5], 128, latent_dim)

    g1 = 1.0 + 0.1 * jax.random.normal(ks[6], (1, 256), jnp.float32)
    be1 = 0.1 * jax.random.normal(ks[7], (1, 256), jnp.float32)
    g2 = 1.0 + 0.05 * jnp.cos(jnp.arange(128, dtype=jnp.float32))[None, :]
    be2 = 0.05 * jnp.sin(jnp.arange(128, dtype=jnp.float32))[None, :]

    return {"w1": w1, "b1": b1, "g1": g1, "be1": be1,
            "w2": w2, "b2": b2, "g2": g2, "be2": be2,
            "w3": w3, "b3": b3}


def _reference_forward(x, params):
    """Full-batch training-mode BatchNorm reference (matches PyTorch fwd)."""
    def bn(h, g, be):
        mu = jnp.mean(h, axis=0, keepdims=True)
        var = jnp.mean((h - mu) ** 2, axis=0, keepdims=True)
        return (h - mu) * jax.lax.rsqrt(var + _BN_EPS) * g + be

    h = jnp.maximum(bn(x @ params["w1"] + params["b1"], params["g1"], params["be1"]), 0.0)
    h = jnp.maximum(bn(h @ params["w2"] + params["b2"], params["g2"], params["be2"]), 0.0)
    z = h @ params["w3"] + params["b3"]
    nrm = jnp.sqrt(jnp.sum(z * z, axis=1, keepdims=True))
    return z / jnp.maximum(nrm, _NORM_EPS)


if __name__ == "__main__":
    B, INPUT_DIM, LATENT_DIM = 8, 32, 16

    key = jax.random.PRNGKey(0)
    kx, kp = jax.random.split(key)
    x = jax.random.normal(kx, (B, INPUT_DIM), jnp.float32)
    params = init_params(kp, INPUT_DIM, LATENT_DIM)
    prep = prepare_params(params)          # one-time weight prep (hoisted)

    out = protein_encoder_forward(x, prep)
    jax.block_until_ready(out)

    assert out.shape == (B, LATENT_DIM)
    # each output row should be (approximately) unit L2 norm
    norms = jnp.sqrt(jnp.sum(out * out, axis=1))
    assert bool(jnp.all(jnp.abs(norms - 1.0) < 1e-3))
    # loose agreement with the f32 reference (kernel uses bf16 MXU operands)
    ref = _reference_forward(x, params)
    assert bool(jnp.max(jnp.abs(out - ref)) < 5e-2)

    print("KERNEL_OK")
</pallas_src>

<mosaic_0001>
module attributes {stable_mosaic.version = 11 : i64} {
  func.func @_stats1_kernel(%arg0: i32, %arg1: i32, %arg2: memref<8x32xf32, #tpu.memory_space<vmem>>, %arg3: memref<32x256xbf16, #tpu.memory_space<vmem>>, %arg4: memref<8x256xf32, #tpu.memory_space<vmem>>, %arg5: memref<8x256xf32, #tpu.memory_space<vmem>>) attributes {dimension_semantics = [#tpu.dimension_semantics<parallel>, #tpu.dimension_semantics<arbitrary>], iteration_bounds = array<i64: 2, 1>, scalar_prefetch = 0 : i64, scratch_operands = 0 : i64, tpu.core_type = #tpu.core_type<tc>, window_params = [{transform_indices = @transform_0, window_bounds = array<i64: 8, 32>}, {pipeline_mode = #tpu.pipeline_mode<synchronous>, transform_indices = @transform_1, window_bounds = array<i64: 32, 256>}, {transform_indices = @transform_2, window_bounds = array<i64: 8, 256>}, {transform_indices = @transform_3, window_bounds = array<i64: 8, 256>}]} {
    %c0_i32 = arith.constant 0 : i32
    %0 = arith.cmpi eq, %arg1, %c0_i32 : i32
    %1 = arith.extui %0 : i1 to i32
    %c0_i32_0 = arith.constant 0 : i32
    %2 = arith.cmpi ne, %1, %c0_i32_0 : i32
    scf.if %2 {
      %cst_16 = arith.constant 0.000000e+00 : f32
      %32 = vector.broadcast %cst_16 : f32 to vector<8x256xf32>
      %c0_17 = arith.constant 0 : index
      %c0_18 = arith.constant 0 : index
      %33 = vector.load %arg4[%c0_17, %c0_18] : memref<8x256xf32, #tpu.memory_space<vmem>>, vector<8x256xf32>
      tpu.vector_store %arg4[%c0_17, %c0_18], %32 {strides = array<i32>} : memref<8x256xf32, #tpu.memory_space<vmem>>, vector<8x256xf32>,
      %cst_19 = arith.constant 0.000000e+00 : f32
      %34 = vector.broadcast %cst_19 : f32 to vector<8x256xf32>
      %c0_20 = arith.constant 0 : index
      %c0_21 = arith.constant 0 : index
      %35 = vector.load %arg5[%c0_20, %c0_21] : memref<8x256xf32, #tpu.memory_space<vmem>>, vector<8x256xf32>
      tpu.vector_store %arg5[%c0_20, %c0_21], %34 {strides = array<i32>} : memref<8x256xf32, #tpu.memory_space<vmem>>, vector<8x256xf32>,
    } else {
    }
    %c0 = arith.constant 0 : index
    %c0_1 = arith.constant 0 : index
    %3 = vector.load %arg2[%c0, %c0_1] : memref<8x32xf32, #tpu.memory_space<vmem>>, vector<8x32xf32>
    %4 = arith.truncf %3 : vector<8x32xf32> to vector<8x32xbf16>
    %c0_2 = arith.constant 0 : index
    %c0_3 = arith.constant 0 : index
    %5 = vector.load %arg3[%c0_2, %c0_3] : memref<32x256xbf16, #tpu.memory_space<vmem>>, vector<32x256xbf16>
    %cst = arith.constant dense<0.000000e+00> : vector<8x256xf32>
    %6 = tpu.matmul %4, %5, %cst {dimension_numbers = #tpu.dot_dimension_numbers<[1], [0], [0], [1], [0, 0, 1, 1], [], []>} : vector<8x32xbf16>, vector<32x256xbf16>, vector<8x256xf32> -> vector<8x256xf32>
    %c1_i32 = arith.constant 1 : i32
    %7 = arith.muli %arg0, %c1_i32 : i32
    %8 = arith.addi %7, %arg1 : i32
    %c8_i32 = arith.constant 8 : i32
    %9 = arith.muli %8, %c8_i32 : i32
    %10 = tpu.iota {dimensions = array<i32: 0>} : vector<8x1xi32>
    %11 = vector.broadcast %9 : i32 to vector<8x1xi32>
    %12 = arith.addi %11, %10 : vector<8x1xi32>
    %c8_i32_4 = arith.constant 8 : i32
    %13 = vector.broadcast %c8_i32_4 : i32 to vector<8x1xi32>
    %14 = arith.cmpi slt, %12, %13 : vector<8x1xi32>
    %cst_5 = arith.constant 0.000000e+00 : f32
    %15 = vector.shape_cast %14 : vector<8x1xi1> to vector<8x1xi1>
    %16 = vector.broadcast %15 : vector<8x1xi1> to vector<8x256xi1>
    %17 = vector.broadcast %cst_5 : f32 to vector<8x256xf32>
    %18 = arith.select %16, %6, %17 : vector<8x256xi1>, vector<8x256xf32>
    %c0_6 = arith.constant 0 : index
    %c0_7 = arith.constant 0 : index
    %19 = vector.load %arg4[%c0_6, %c0_7] : memref<8x256xf32, #tpu.memory_space<vmem>>, vector<8x256xf32>
    %cst_8 = arith.constant dense<0.000000e+00> : vector<256xf32>
    %20 = vector.multi_reduction <add>, %18, %cst_8 [0] : vector<8x256xf32> to vector<256xf32>
    %21 = vector.shape_cast %20 : vector<256xf32> to vector<1x256xf32>
    %22 = vector.broadcast %21 : vector<1x256xf32> to vector<8x256xf32>
    %23 = arith.addf %19, %22 : vector<8x256xf32>
    %c0_9 = arith.constant 0 : index
    %c0_10 = arith.constant 0 : index
    %24 = vector.load %arg4[%c0_9, %c0_10] : memref<8x256xf32, #tpu.memory_space<vmem>>, vector<8x256xf32>
    tpu.vector_store %arg4[%c0_9, %c0_10], %23 {strides = array<i32>} : memref<8x256xf32, #tpu.memory_space<vmem>>, vector<8x256xf32>,
    %c0_11 = arith.constant 0 : index
    %c0_12 = arith.constant 0 : index
    %25 = vector.load %arg5[%c0_11, %c0_12] : memref<8x256xf32, #tpu.memory_space<vmem>>, vector<8x256xf32>
    %26 = arith.mulf %18, %18 : vector<8x256xf32>
    %cst_13 = arith.constant dense<0.000000e+00> : vector<256xf32>
    %27 = vector.multi_reduction <add>, %26, %cst_13 [0] : vector<8x256xf32> to vector<256xf32>
    %28 = vector.shape_cast %27 : vector<256xf32> to vector<1x256xf32>
    %29 = vector.broadcast %28 : vector<1x256xf32> to vector<8x256xf32>
    %30 = arith.addf %25, %29 : vector<8x256xf32>
    %c0_14 = arith.constant 0 : index
    %c0_15 = arith.constant 0 : index
    %31 = vector.load %arg5[%c0_14, %c0_15] : memref<8x256xf32, #tpu.memory_space<vmem>>, vector<8x256xf32>
    tpu.vector_store %arg5[%c0_14, %c0_15], %30 {strides = array<i32>} : memref<8x256xf32, #tpu.memory_space<vmem>>, vector<8x256xf32>,
    return
  }
  func.func @transform_0(%arg0: i32, %arg1: i32) -> (i32, i32) {
    %c1_i32 = arith.constant 1 : i32
    %0 = arith.muli %arg0, %c1_i32 : i32
    %1 = arith.addi %0, %arg1 : i32
    %c0_i32 = arith.constant 0 : i32
    %2 = arith.minsi %1, %c0_i32 : i32
    %c0_i32_0 = arith.constant 0 : i32
    %c0_i32_1 = arith.constant 0 : i32
    return %2, %c0_i32_0 : i32, i32
  }
  func.func @transform_1(%arg0: i32, %arg1: i32) -> (i32, i32) {
    %c0_i32 = arith.constant 0 : i32
    %c0_i32_0 = arith.constant 0 : i32
    %c0_i32_1 = arith.constant 0 : i32
    return %c0_i32, %c0_i32_0 : i32, i32
  }
  func.func @transform_2(%arg0: i32, %arg1: i32) -> (i32, i32) {
    %c0_i32 = arith.constant 0 : i32
    %c0_i32_0 = arith.constant 0 : i32
    return %arg0, %c0_i32 : i32, i32
  }
  func.func @transform_3(%arg0: i32, %arg1: i32) -> (i32, i32) {
    %c0_i32 = arith.constant 0 : i32
    %c0_i32_0 = arith.constant 0 : i32
    return %arg0, %c0_i32 : i32, i32
  }
}

</mosaic_0001>

<bundles_post_ra>
// kernel: tpu_custom_call.1
= control target key start
LH: loop header
LB: loop body
LE: loop exit
PB: predicated region body
PF: predicated region fallthrough
CT: control target
= control target key end

     0   :  { %9 = vsyncpa [#allocation3], 0  ;;  %s1119_s0 = inlined_call_operand.hbm [shape: f32[8,32], index: 0, kind: input, shape index: {}]   ;;  %s1120_s1 = inlined_call_operand.hbm [shape: bf16[32,256], index: 1, kind: input, shape index: {}]   ;;  %s1121_s2 = inlined_call_operand.hbm [shape: f32[16,256], index: 2, kind: output, shape index: {0}]   ;;  %s1122_s3 = inlined_call_operand.hbm [shape: f32[16,256], index: 3, kind: output, shape index: {1}]  }
   0x1   :  { %11 = vsyncpa [#allocation3 + $0x1], 0 }
   0x2   :  { %12 = vsyncpa [#allocation6], 0 }
   0x3   :  { %13 = vsyncpa [#allocation4], 0 }
   0x4   :  { %15 = vsyncpa [#allocation4 + $0x1], 0 }
   0x5   :  { %16 = vsyncpa [#allocation9], 0 }
   0x6   :  { %18 = vsyncpa [#allocation9 + $0x1], 0  ;;  %s885_s12 = smov 0   ;;  %s887_s13 = smov 0  }
   0x7   :  { %s889_s14 = smov 0   ;;  %s891_s15 = smov 0  }
   0x8   :  { %s893_s16 = smov 0   ;;  %s895_s17 = smov 0  }
   0x9   :  { %s897_s18 = smov 0   ;;  %s899_s19 = smov 0  }
   0xa LB: > { %s519_s20 = sadd.s32 4294967295, %s856_s19   ;;  %s520_s21 = sadd.s32 4294967294, %s856_s19   ;;  %s856_s19 = sphi %s899_s19, %s24_s19   ;;  %s852_s18 = sphi %s897_s18, %s1148_s18   ;;  %s848_s17 = sphi %s895_s17, %s1147_s17   ;;  %s844_s16 = sphi %s893_s16, %s1109_s16   ;;  %s840_s15 = sphi %s891_s15, %s1146_s15   ;;  %s836_s14 = sphi %s889_s14, %s1145_s14   ;;  %s832_s13 = sphi %s887_s13, %s1144_s13   ;;  %s828_s12 = sphi %s885_s12, %s1143_s12  }
   0xb   : > { %p62_p0 = scmp.ne.s32.totalorder %s844_s16, %s840_s15  ;;  %p926_p1 = scmp.eq.s32.totalorder %s519_s20, 0 }
   0xc   : > { %p106_p2 = scmp.ne.s32.totalorder %s836_s14, %s832_s13  ;;  %p107_p3 = scmp.eq.s32.totalorder %s519_s20, 1 }
   0xd   : > { %s1129_s22 = scalar_select %p926_p1, 1, 0 }
   0xe   : > { %p934_p4 = por %p926_p1, %p62_p0  ;;  %p112_p5 = scmp.ne.s32.totalorder %s832_s13, %s828_s12 }
   0xf   : > { %p940_p6 = por %p107_p3, %p106_p2  ;;  %p113_p7 = scmp.eq.s32.totalorder %s520_s21, 1 }
  0x10   : > { %s1130_s23 = scalar_select %p934_p4, 1, 0 }
  0x11   : > { %s1131_s24 = scalar_select %p940_p6, 1, 0 }
  0x12   : > { %p521_p8 = scmp.ge.s32.totalorder %s856_s19, 1  ;;  %p146_p9 = scmp.lt.s32.totalorder %s856_s19, 3 }
  0x13   : > { %p946_p10 = por %p113_p7, %p112_p5  ;;  %s858_s27 = smov [#allocation5]  }
  0x14   : > { %p950_p11 = pnand %p521_p8, %p146_p9  ;;  %s158_s28 = sshll.u32 %s858_s27, 4  ;;  %s159_s28 = int_to_ptr.vmem [resolvable:$true] %s158_s28 }
  0x15   : > { %s1132_s25 = scalar_select %p946_p10, 1, 0 }
  0x16   : > { %s1133_s26 = scalar_select %p950_p11, 1, 0 }
  0x17   : > { %p557_p12 = pneg %p950_p11  ;;  %s659_s5 = scalar_lea.hbm %s1120_s1, 512 }
  0x18   : > { %p660_p2 = scmp.ne.s32.totalorder %s1120_s1, %s659_s5  ;;  %p666_p8 = scmp.lt.u32.totalorder %s659_s5, %s1120_s1 }
  0x19   : > { %p959_p0 = pnand %p557_p12, %p926_p1 }
  0x1b   : > { %p661_p3 = pneg %p959_p0 }
  0x1d   : > { %p662_p5 = pnand %p661_p3, %p660_p2 }
  0x1f   : > { %p663_p7 = pneg %p662_p5 }
  0x21   : > { %p668_p9 = pnand %p666_p8, %p663_p7 }
  0x23   : > { %671 = shalt.err (!%p668_p9)
}
  0x24   : > { %s672_s10 = scalar_lea.vmem %s159_s28, 512  ;;  %p680_p6 = scmp.lt.s32.totalorder %s159_s28, %s159_s28 }
  0x25   : > { %p673_p12 = scmp.ne.s32.totalorder %s159_s28, %s672_s10  ;;  %p681_p1 = scmp.lt.s32.totalorder %s672_s10, %s672_s10 }
  0x27   : > { %p675_p13 = pnand %p673_p12, %p661_p3  ;;  %p682_p4 = por %p681_p1, %p680_p6 }
  0x29   : > { %p676_p10 = pneg %p675_p13 }
  0x2b   : > { %p683_p11 = pnand %p682_p4, %p676_p10 }
  0x2d   : > { %686 = shalt.err (!%p683_p11)
}
  0x2e   : > { %s859_s11 = smov 128   ;;  %s860_s15 = smov 8  }
  0x2f   : > { %560 = dma.hbm_to_vmem [thread:$0]  (!%p959_p0), %s1120_s1, 512, %s159_s28, [#allocation6], %s859_s11, %s859_s11, %s860_s15  }
  0x30   : > { %s36_s27 = sadd.s32 1, %s852_s18  ;;  %p825_p1 = scmp.ne.s32.totalorder %s844_s16, 0 }
  0x31   : > { %p38_p13 = scmp.ge.s32.totalorder %s36_s27, 2  ;;  %p57_p4 = scmp.eq.s32.totalorder %s856_s19, 0 }
  0x32   : > { %s96_s4 = sadd.s32 1, %s836_s14  ;;  %p573_p11 = scmp.lt.s32.totalorder %s856_s19, 2 }
  0x33   : > { %s1150_s27 = smov (%p38_p13, %s36_s27), 0  ;;  %p58_p6 = por %p825_p1, %p57_p4 }
  0x34   : > { %s93_s30 = ssub.s32 %s852_s18, %s1150_s27  ;;  %s861_s6 = smov [#allocation2]  }
  0x35   : > { %p94_p10 = scmp.eq.s32.totalorder %s93_s30, 0  ;;  %s186_s29 = sshll.u32 %s861_s6, 4  ;;  %s187_s29 = int_to_ptr.vmem [resolvable:$true] %s186_s29 }
  0x36   : > { %p991_p2 = pnand %p573_p11, %p58_p6  ;;  %s687_s9 = scalar_lea.hbm %s1119_s0, 128 }
  0x37   : > { %s989_s5 = scalar_select %p94_p10, %s836_s14, %s96_s4  }
  0x38   : > { %s1135_s7 = scalar_select %p991_p2, 1, 0 }
  0x39   : > { %p688_p0 = scmp.ne.s32.totalorder %s1119_s0, %s687_s9  ;;  %p689_p3 = pneg %p991_p2 }
  0x3a   : > { %p694_p8 = scmp.lt.u32.totalorder %s687_s9, %s687_s9  ;;  %p696_p9 = scmp.lt.u32.totalorder %s687_s9, %s1119_s0 }
  0x3b   : > { %p690_p5 = pnand %p689_p3, %p688_p0 }
  0x3c   : > { %p697_p12 = por %p696_p9, %p694_p8 }
  0x3d   : > { %p691_p7 = pneg %p690_p5 }
  0x3f   : > { %p698_p13 = pnand %p697_p12, %p691_p7 }
  0x41   : > { %701 = shalt.err (!%p698_p13)
}
  0x42   : > { %s702_s21 = scalar_lea.vmem %s187_s29, 128  ;;  %s709_s30 = scalar_lea.vmem %s187_s29, 256 }
  0x43   : > { %p703_p1 = scmp.ne.s32.totalorder %s187_s29, %s702_s21  ;;  %p710_p10 = scmp.lt.s32.totalorder %s187_s29, %s187_s29 }
  0x44   : > { %p711_p11 = scmp.lt.s32.totalorder %s709_s30, %s702_s21 }
  0x45   : > { %p705_p4 = pnand %p703_p1, %p689_p3 }
  0x46   : > { %p712_p2 = por %p711_p11, %p710_p10 }
  0x47   : > { %p706_p6 = pneg %p705_p4 }
  0x49   : > { %p713_p0 = pnand %p712_p2, %p706_p6 }
  0x4b   : > { %716 = shalt.err (!%p713_p0)
}
  0x4c   : > { %p1136_p5 = scmp.ne.s32.totalorder %s1135_s7, 0  ;;  %p1137_p8 = scmp.ne.s32.totalorder %s1133_s26, 0 }
  0x4d   : > { %s197_s28 = sand.u32 (!%p1137_p8), 1, %s844_s16   ;;  %p1138_p3 = scmp.ne.s32.totalorder (!%p1137_p8), %s1130_s23, 0 }
  0x4e   : > { %564 = dma.hbm_to_vmem [thread:$0]  (!%p1136_p5), %s1119_s0, 128, %s187_s29, [#allocation3]  }
  0x4f   : > { %195 = sbr.rel (%p1137_p8) target bundleno = 363 (0x16b), region = 28  ;;  %s527_s8 = sshll.u32 (!%p1137_p8), %s197_s28, 3 }
  0x50   : > { %s198_s9 = scalar_lea.sflag (!%p1137_p8), [#allocation3], %s197_s28  ;;  %s201_s10 = scalar_lea.vmem (!%p1137_p8), [#allocation2], %s527_s8 }
  0x56   : > { %810 = dma.done.wait (%p1138_p3), %s198_s9, 128  }
  0x57   : > { %812 = vsyncadd (%p1138_p3), %s198_s9, 4294967168  ;;  %p1139_p2 = scmp.ne.s32.totalorder %s1129_s22, 0 }
  0x59   : > { %814 = dma.done.wait (%p1139_p2), [#allocation6], 512  }
  0x5a   : > { %816 = vsyncadd (%p1139_p2), [#allocation6], 4294966784  ;;  %v862_v0 = vmov 0   ;;  %v653_v1 = vld [vmem:[#allocation5 + $0x4] ss:$8 sps:$4 sm:$0xff]   ;;  %v245_v5 = vld [vmem:[%s201_s10] sm:$0xff]  ;;  %v318_v7 = vlaneseq }
  0x5b   : > { %307 = vmatprep.mubr.bf16.mxu0 %v862_v0  ;;  %v655_v2 = vld [vmem:[#allocation5] ss:$8 sps:$4 sm:$0xff]   ;;  %275 = vmatprep.subr.bf16.mxu0 %v653_v1  ;;  %v656_v3 = vld [vmem:[#allocation5 + $0x14] ss:$8 sps:$4 sm:$0xff]   ;;  %v658_v4 = vld [vmem:[#allocation5 + $0x10] ss:$8 sps:$4 sm:$0xff]   ;;  %v246_v6 = vpack.c.bf16 %v245_v5, %v245_v5 }
  0x5c   : > { %276 = vmatpush1.bf16.msra.mxu0 %v655_v2  ;;  %vm271_vm0 = vcmask 261120   ;;  %s536_s23 = sshll.u32 %s848_s17, 3  ;;  %v319_v8 = vshrl.u32 %v318_v7, 7  ;;  %s1024_s22 = sand.u32 1, %s832_s13  }
  0x5d   : > { %277 = vmatprep.subr.bf16.mxu0 %v656_v3  ;;  %v320_v9 = vstv %s536_s23  ;;  %s529_s26 = sshll.u32 %s1024_s22, 4  ;;  %s545_s29 = sshll.u32 %s848_s17, 8 }
  0x5e   : > { %v321_v10 = vadd.s32 %v320_v9, %v319_v8  ;;  %s225_s7 = scalar_lea.vmem [#allocation7], %s529_s26  ;;  %s1028_s15 = scalar_lea.vmem [#allocation8], %s529_s26 }
  0x5f   : > { %s385_s11 = sshll.u32 %s225_s7, 4  ;;  %s399_s20 = sshll.u32 %s1028_s15, 4  ;;  %s1036_s11 = int_to_ptr.vmem [resolvable:$true] %s385_s11  ;;  %s1043_s20 = int_to_ptr.vmem [resolvable:$true] %s399_s20 }
  0x60   : > { %278 = vmatpush1.bf16.msra.mxu0 %v658_v4  ;;  %vm322_vm1 = vcmp.lt.s32.totalorder %v321_v10, 8  ;;  %s1034_s4 = scalar_lea.hbm %s1121_s2, %s545_s29  ;;  %s1041_s28 = scalar_lea.hbm %s1122_s3, %s545_s29 }
  0x61   : > { %s366_s8 = scalar_lea.sflag [#allocation4], %s1024_s22  ;;  %s717_s9 = scalar_lea.vmem %s1036_s11, 256 }
  0x62   : > { %p718_p7 = scmp.ne.s32.totalorder %s1036_s11, %s717_s9  ;;  %p1140_p9 = scmp.ne.s32.totalorder %s1131_s24, 0 }
  0x63   : > { %535 = vmatmul.mubr.msk.bf16.vlgmr.msra.gmra.mrb[0].mxu0 %vm271_vm0, %v246_v6  ;;  %s863_s10 = smov [#allocation7]  }
  0x64   : > { %p719_p12 = pnand %p718_p7, %p1140_p9  ;;  %s721_s23 = sshll.u32 %s863_s10, 4  ;;  %s722_s23 = int_to_ptr.vmem [resolvable:$false] %s721_s23 }
  0x65   : > { %s723_s26 = scalar_lea.vmem %s722_s23, 512  ;;  %p724_p1 = scmp.lt.s32.totalorder %s1036_s11, %s722_s23 }
  0x66   : > { %p720_p13 = pneg %p719_p12  ;;  %p725_p4 = scmp.lt.s32.totalorder %s723_s26, %s717_s9 }
  0x68   : > { %p726_p6 = por %p725_p4, %p724_p1 }
  0x6a   : > { %p727_p10 = pnand %p726_p6, %p720_p13 }
 0x136   : > { %v309_v11 = vpop.f32.mrb[0].mxu0 }
 0x137   : > { %v325_v12 = vsel %vm322_vm1, %v309_v11, 0.0  ;;  %v311_v13 = vpop.f32.mrb[1].mxu0 }
 0x138   : > { %v329_v14 = vrot.slane %v325_v12, 4  ;;  %v347_v15 = vmul.f32 %v325_v12, %v325_v12  ;;  %v326_v16 = vsel %vm322_vm1, %v311_v13, 0.0  ;;  %v313_v17 = vpop.f32.mrb[2].mxu0 }
 0x139   : > { %v335_v18 = vrot.slane %v326_v16, 4  ;;  %v348_v19 = vmul.f32 %v326_v16, %v326_v16  ;;  %v314_v20 = vpop.f32.mrb[3].mxu0 }
 0x13a   : > { %v330_v21 = vadd.f32 %v329_v14, %v325_v12  ;;  %v349_v22 = vrot.slane %v347_v15, 4 }
 0x13b   : > { %v336_v23 = vadd.f32 %v335_v18, %v326_v16  ;;  %v355_v24 = vrot.slane %v348_v19, 4 }
 0x13c   : > { %v331_v25 = vrot.slane %v330_v21, 2  ;;  %v350_v26 = vadd.f32 %v349_v22, %v347_v15 }
 0x13d   : > { %v337_v27 = vrot.slane %v336_v23, 2  ;;  %v356_v28 = vadd.f32 %v355_v24, %v348_v19 }
 0x13e   : > { %v332_v29 = vadd.f32 %v331_v25, %v330_v21  ;;  %v351_v30 = vrot.slane %v350_v26, 2 }
 0x13f   : > { %v338_v31 = vadd.f32 %v337_v27, %v336_v23  ;;  %v357_v32 = vrot.slane %v356_v28, 2 }
 0x140   : > { %v333_v33 = vrot.slane %v332_v29, 1  ;;  %v352_v34 = vadd.f32 %v351_v30, %v350_v26 }
 0x141   : > { %v339_v35 = vrot.slane %v338_v31, 1  ;;  %v358_v36 = vadd.f32 %v357_v32, %v356_v28 }
 0x142   : > { %v334_v37 = vadd.f32 %v333_v33, %v332_v29  ;;  %v353_v38 = vrot.slane %v352_v34, 1 }
 0x143   : > { %v340_v39 = vadd.f32 %v339_v35, %v338_v31  ;;  %v359_v40 = vrot.slane %v358_v36, 1 }
 0x144   : > { %v354_v41 = vadd.f32 %v353_v38, %v352_v34  ;;  %343 = vst [vmem:[%s225_s7] sm:$0xff] %v334_v37 }
 0x145   : > { %v360_v42 = vadd.f32 %v359_v40, %v358_v36  ;;  %344 = vst [vmem:[%s225_s7 + $0x8] sm:$0xff] %v340_v39 }
 0x146   : > { %363 = vst [vmem:[%s1028_s15] sm:$0xff] %v354_v41 }
 0x147   : > { %730 = shalt.err (!%p727_p10)
}
 0x148   : > { %s731_s29 = scalar_lea.hbm %s1034_s4, 256  ;;  %s735_s30 = scalar_lea.hbm %s1121_s2, 512 }
 0x149   : > { %p732_p11 = scmp.ne.s32.totalorder %s1034_s4, %s731_s29  ;;  %p736_p8 = scmp.lt.u32.totalorder %s1034_s4, %s1121_s2 }
 0x14a   : > { %p737_p3 = scmp.lt.u32.totalorder %s735_s30, %s731_s29  ;;  %p739_p7 = scmp.lt.u32.totalorder %s731_s29, %s1034_s4 }
 0x14b   : > { %p733_p0 = pnand %p732_p11, %p1140_p9 }
 0x14c   : > { %p738_p2 = por %p737_p3, %p736_p8 }
 0x14d   : > { %p734_p5 = pneg %p733_p0 }
 0x14e   : > { %p740_p12 = por %p739_p7, %p738_p2 }
 0x150   : > { %p741_p13 = pnand %p740_p12, %p734_p5 }
 0x152   : > { %744 = shalt.err (!%p741_p13)
}
 0x153   : > { %553 = dma.vmem_to_hbm [thread:$0]  (%p1140_p9), %s1036_s11, 256, %s1034_s4, %s366_s8   ;;  %364 = vst [vmem:[%s1028_s15 + $0x8] sm:$0xff] %v360_v42 }
 0x154   : > { %s371_s9 = scalar_lea.sflag [#allocation9], %s1024_s22  ;;  %s745_s10 = scalar_lea.vmem %s1043_s20, 256 }
 0x155   : > { %p746_p1 = scmp.ne.s32.totalorder %s1043_s20, %s745_s10  ;;  %s864_s23 = smov [#allocation8]  }
 0x156   : > { %s749_s26 = sshll.u32 %s864_s23, 4  ;;  %s750_s26 = int_to_ptr.vmem [resolvable:$false] %s749_s26 }
 0x157   : > { %p747_p4 = pnand %p746_p1, %p1140_p9  ;;  %s751_s29 = scalar_lea.vmem %s750_s26, 512 }
 0x158   : > { %p752_p10 = scmp.lt.s32.totalorder %s1043_s20, %s750_s26  ;;  %p753_p11 = scmp.lt.s32.totalorder %s751_s29, %s745_s10 }
 0x159   : > { %p748_p6 = pneg %p747_p4 }
 0x15a   : > { %p754_p0 = por %p753_p11, %p752_p10 }
 0x15c   : > { %p755_p5 = pnand %p754_p0, %p748_p6 }
 0x15e   : > { %758 = shalt.err (!%p755_p5)
}
 0x15f   : > { %s759_s22 = scalar_lea.hbm %s1041_s28, 256  ;;  %s763_s4 = scalar_lea.hbm %s1122_s3, 512 }
 0x160   : > { %p760_p8 = scmp.ne.s32.totalorder %s1041_s28, %s759_s22  ;;  %p764_p7 = scmp.lt.u32.totalorder %s1041_s28, %s1122_s3 }
 0x161   : > { %p765_p12 = scmp.lt.u32.totalorder %s763_s4, %s759_s22  ;;  %p767_p1 = scmp.lt.u32.totalorder %s759_s22, %s1041_s28 }
 0x162   : > { %p761_p3 = pnand %p760_p8, %p1140_p9 }
 0x163   : > { %p766_p13 = por %p765_p12, %p764_p7 }
 0x164   : > { %p762_p2 = pneg %p761_p3 }
 0x165   : > { %p768_p4 = por %p767_p1, %p766_p13 }
 0x167   : > { %p769_p6 = pnand %p768_p4, %p762_p2 }
 0x169   : > { %772 = shalt.err (!%p769_p6)
}
 0x16a   : > { %554 = dma.vmem_to_hbm [thread:$0]  (%p1140_p9), %s1043_s20, 256, %s1041_s28, %s371_s9  }
 0x16b PF: > { %s411_s21 = sand.u32 1, %s828_s12   ;;  %p1141_p10 = scmp.ne.s32.totalorder %s1132_s25, 0 }
 0x16c   : > { %p1142_p11 = scmp.ge.s32.totalorder %s856_s19, 2  ;;  %s412_s30 = scalar_lea.sflag [#allocation4], %s411_s21 }
 0x16e   : > { %p566_p0 = pnand %p1142_p11, %p1141_p10 }
 0x170   : > { %818 = dma.done.wait (!%p566_p0), %s412_s30, 256  }
 0x171   : > { %820 = vsyncadd (!%p566_p0), %s412_s30, 4294967040  ;;  %s421_s17 = scalar_lea.sflag [#allocation9], %s411_s21 }
 0x172   : > { %822 = dma.done.wait (!%p566_p0), %s421_s17, 256  }
 0x173   : > { %824 = vsyncadd (!%p566_p0), %s421_s17, 4294967040  ;;  %s24_s19 = sadd.s32 1, %s856_s19   ;;  %s1143_s12 = smov %s832_s13 }
 0x174   : > { %p21_p5 = scmp.ge.s32.totalorder %s24_s19, 4   ;;  %s1144_s13 = smov %s836_s14 }
 0x175   : > { %s1145_s14 = smov %s989_s5  ;;  %s1146_s15 = smov %s844_s16 }
 0x176   : > { %s1109_s16 = smov 0   ;;  %s1147_s17 = smov %s852_s18 }
 0x177   : > { %s1148_s18 = smov %s1150_s27  ;;  %23 = sbr.rel (!%p21_p5) target bundleno = 10 (0xa), region = 98 }
 0x17e   :  { %426 = vsyncpa [#allocation3], 1 }
 0x17f   :  { %428 = vsyncpa [#allocation3 + $0x1], 1 }
 0x180   :  { %429 = vsyncpa [#allocation6], 1 }
 0x181   :  { %430 = vsyncpa [#allocation4], 1 }
 0x182   :  { %432 = vsyncpa [#allocation4 + $0x1], 1 }
 0x183   :  { %433 = vsyncpa [#allocation9], 1 }
 0x184   :  { %435 = vsyncpa [#allocation9 + $0x1], 1 }

</bundles_post_ra>
